<compile_context>
chip_gen: v5e
topology: v5e:2x2
jax: 0.10.0
libtpu: 0.0.40
codegen_flags: <defaults>
</compile_context>

<pallas_src>
import functools

import jax
import jax.numpy as jnp
from jax import lax
from jax.experimental import pallas as pl
from jax.experimental.pallas import tpu as pltpu


def _round_up(x: int, m: int) -> int:
    return ((x + m - 1) // m) * m


def _cdiv(a: int, b: int) -> int:
    return -(-a // b)


def _plan_tiles(R: int, S: int, max_col: int):
    """Choose sub-row split factor k and (row_tile, col_tile)."""
    # Sub-row split: fills sublanes and gives the parallel row axis >= 2 tiles
    # when N*C is small, without changing the per-(n, c) dice sums (the wrapper
    # regroups the k sub-rows of every original row).
    k = 1
    if R < 256:
        for cand in (16, 8, 4, 2):
            if S % cand == 0 and S // cand >= 512:
                k = cand
                break
    Rk, Sk = R * k, S // k

    # Column tiling: never pad; always a multiple of 128 unless S is tiny.
    if Sk >= 128:
        col_tile = min((Sk // 128) * 128, max_col)
    else:
        col_tile = Sk                          # full-extent block (always legal)

    # Row tiling: multiple of max(8, k) so every row tile covers whole (n, c) rows.
    g = max(8, k)
    if Rk >= g:
        row_tile = min((Rk // g) * g, 128)
        if _cdiv(Rk, row_tile) < 2 and Rk >= 2 * g:
            # Split into two row tiles so both v7x TensorCores get work.
            row_tile = _round_up((Rk + 1) // 2, g)
    else:
        row_tile = Rk                          # tiny input: one full-extent block
    return k, Rk, Sk, row_tile, col_tile


def _bce_dice_stats_kernel(pred_ref, targ_ref, out_ref, *,
                           n_subrows, n_cols, row_tile, col_tile,
                           rows_padded, cols_padded, approx_sigmoid):
    rt = pl.program_id(0)                      # row tiles    ("parallel")
    ct = pl.program_id(1)                      # column tiles ("arbitrary", reduction)

    # The lane-dense output block doubles as the accumulator (f32, revisited
    # across the column axis; flushed to HBM when the row tile changes).
    @pl.when(ct == 0)
    def _():
        out_ref[...] = jnp.zeros(out_ref.shape, jnp.float32)

    x = pred_ref[...].astype(jnp.float32)      # logits (any input dtype)
    t = targ_ref[...].astype(jnp.float32)      # targets in [0, 1]

    def fold(a):
        """(row_tile, col_tile) -> (row_tile, 128) lane-group partial sums.

        Pure lane-aligned VPU adds; the single cross-lane (XLU) reduction is
        deferred to the wrapper epilogue (removes 4 full-row XLU reductions per
        grid step)."""
        if col_tile % 128 == 0:
            acc = a[:, 0:128]
            for gidx in range(1, col_tile // 128):
                acc = acc + a[:, gidx * 128:(gidx + 1) * 128]
            return acc
        # Tiny-S fallback (col_tile == full S < 128): one small XLU reduce.
        s = jnp.sum(a, axis=1, keepdims=True)
        lane = lax.broadcasted_iota(jnp.int32, (row_tile, 128), 1)
        return jnp.where(lane == 0, s, 0.0)

    def accumulate(x, t, valid):
        # One exp per element, reused for the stable BCE term and the sigmoid.
        e = jnp.exp(-jnp.abs(x))
        bce = jnp.maximum(x, 0.0) - x * t + jnp.log1p(e)
        denom = 1.0 + e
        if approx_sigmoid:
            inv = pl.reciprocal(denom, approx=True)    # EUP-only, frees VALU slots
        else:
            inv = 1.0 / denom
        p = jnp.where(x >= 0.0, inv, e * inv)          # sigmoid(x)
        if valid is not None:                          # edge tiles only
            bce = jnp.where(valid, bce, 0.0)
            p = jnp.where(valid, p, 0.0)
            t = jnp.where(valid, t, 0.0)
        out_ref[:, 0:128] += fold(p * t)               # intersection partials
        out_ref[:, 128:256] += fold(p)                 # sum sigmoid(pred)
        out_ref[:, 256:384] += fold(t)                 # sum target
        out_ref[:, 384:512] += fold(bce)               # BCE partial sums

    if not (rows_padded or cols_padded):
        # Perfectly tiled problem: no mask work anywhere.
        accumulate(x, t, None)
    else:
        conds = []
        if rows_padded:
            conds.append(rt == pl.num_programs(0) - 1)
        if cols_padded:
            conds.append(ct == pl.num_programs(1) - 1)
        is_edge = conds[0] if len(conds) == 1 else jnp.logical_or(conds[0], conds[1])

        @pl.when(jnp.logical_not(is_edge))
        def _():
            accumulate(x, t, None)                     # interior: no mask ops

        @pl.when(is_edge)
        def _():
            # Edge blocks contain stale VMEM beyond the array bounds: mask every
            # term (bce, p AND t) before accumulating.
            rid = rt * row_tile + lax.broadcasted_iota(
                jnp.int32, (row_tile, col_tile), 0)
            cid = ct * col_tile + lax.broadcasted_iota(
                jnp.int32, (row_tile, col_tile), 1)
            accumulate(x, t, (rid < n_subrows) & (cid < n_cols))


def bce_dice_loss(pred, target, smooth=1.0, bce_weight=0.5, approx_sigmoid=True):
    """pred (logits), target: (N, C, H, W) arrays of any float/int dtype.

    Returns the scalar fp32 BceDice loss:
        bce_weight * BCEWithLogits(pred, target)
        + (1 - bce_weight) * DiceLoss(sigmoid(pred), target)
    """
    N, C, H, W = pred.shape
    R, S = N * C, H * W

    # Generation-aware tile budget (v5e/v6e: 128 MiB physical VMEM -> bigger
    # tiles + higher scoped limit; v7x: 64 MiB -> keep the footprint capped).
    try:
        vmem_cap = pltpu.get_tpu_info().vmem_capacity_bytes
    except Exception:
        vmem_cap = 64 << 20
    if vmem_cap >= (128 << 20):
        max_col, vmem_limit = 8192, 64 << 20
    else:
        max_col, vmem_limit = 4096, 32 << 20

    k, Rk, Sk, row_tile, col_tile = _plan_tiles(R, S, max_col)
    p2 = pred.reshape(Rk, Sk)                  # pure views, no HBM copies
    t2 = target.reshape(Rk, Sk)

    r_tiles = _cdiv(Rk, row_tile)
    s_tiles = _cdiv(Sk, col_tile)
    rows_padded = r_tiles * row_tile != Rk
    cols_padded = s_tiles * col_tile != Sk

    kernel = functools.partial(
        _bce_dice_stats_kernel,
        n_subrows=Rk, n_cols=Sk, row_tile=row_tile, col_tile=col_tile,
        rows_padded=rows_padded, cols_padded=cols_padded,
        approx_sigmoid=approx_sigmoid)

    in_bytes = pred.dtype.itemsize + target.dtype.itemsize
    cost = pl.CostEstimate(
        flops=int(20 * Rk * Sk),
        transcendentals=int(2 * Rk * Sk),
        bytes_accessed=int(Rk * Sk * in_bytes + r_tiles * row_tile * 512 * 4))

    stats = pl.pallas_call(
        kernel,
        out_shape=jax.ShapeDtypeStruct((r_tiles * row_tile, 512), jnp.float32),
        grid_spec=pltpu.PrefetchScalarGridSpec(
            num_scalar_prefetch=0,
            grid=(r_tiles, s_tiles),           # reduction (columns) innermost
            in_specs=[
                pl.BlockSpec((row_tile, col_tile), lambda i, j: (i, j)),
                pl.BlockSpec((row_tile, col_tile), lambda i, j: (i, j)),
            ],
            out_specs=pl.BlockSpec((row_tile, 512), lambda i, j: (i, 0)),
        ),
        compiler_params=pltpu.CompilerParams(
            dimension_semantics=("parallel", "arbitrary"),
            vmem_limit_bytes=vmem_limit,
        ),
        cost_estimate=cost,
    )(p2, t2)

    # Tiny epilogue (O(R*k) work): cross-lane reduce of the 128-lane partial
    # sums, regroup the k sub-rows of each (n, c) row, and combine the loss.
    per_subrow = stats.reshape(r_tiles * row_tile, 4, 128).sum(axis=-1)
    per_subrow = per_subrow[:Rk]               # rows past Rk are exact zeros
    per_row = per_subrow.reshape(R, k, 4).sum(axis=1)
    inter = per_row[:, 0]
    psum = per_row[:, 1]
    tsum = per_row[:, 2]
    bce_sum = per_row[:, 3]
    dice = 1.0 - (2.0 * inter + smooth) / (psum + tsum + smooth)
    bce = jnp.sum(bce_sum) / float(R * S)
    return bce * bce_weight + jnp.mean(dice) * (1.0 - bce_weight)


def _reference(pred, target, smooth=1.0, bce_weight=0.5):
    """Pure-JAX reference matching the PyTorch BceDiceLoss forward."""
    x, t = pred.astype(jnp.float32), target.astype(jnp.float32)
    bce = jnp.mean(jnp.maximum(x, 0.0) - x * t + jnp.log1p(jnp.exp(-jnp.abs(x))))
    p = jax.nn.sigmoid(x)
    inter = jnp.sum(p * t, axis=(2, 3))
    dice = jnp.mean(1.0 - (2.0 * inter + smooth)
                    / (jnp.sum(p, axis=(2, 3)) + jnp.sum(t, axis=(2, 3)) + smooth))
    return bce * bce_weight + dice * (1.0 - bce_weight)


if __name__ == "__main__":
    key = jax.random.PRNGKey(0)
    k1, k2, k3, k4, k5, k6 = jax.random.split(key, 6)

    # Case 1: small aligned shape, f32 inputs, single tile.
    p1 = jax.random.normal(k1, (2, 4, 16, 16), dtype=jnp.float32)
    t1 = jax.random.bernoulli(k2, 0.5, (2, 4, 16, 16)).astype(jnp.float32)
    ref1 = _reference(p1, t1)
    out1_exact = bce_dice_loss(p1, t1, approx_sigmoid=False)
    jax.block_until_ready(out1_exact)
    assert jnp.allclose(out1_exact, ref1, atol=1e-5, rtol=1e-5), (out1_exact, ref1)
    out1 = bce_dice_loss(p1, t1)  # default: approx EUP reciprocal in the sigmoid
    jax.block_until_ready(out1)
    # Loose tolerance only accounts for the approximate EUP reciprocal.
    assert jnp.allclose(out1, ref1, atol=1e-3, rtol=1e-3), (out1, ref1)

    # Case 2: non-aligned shape -> un-padded edge tiles on BOTH grid axes plus
    # sub-row split (k=4) and the multi-column-tile accumulation path.
    p2 = jax.random.normal(k3, (2, 3, 48, 48), dtype=jnp.float32)
    t2 = jax.random.bernoulli(k4, 0.3, (2, 3, 48, 48)).astype(jnp.float32)
    ref2 = _reference(p2, t2)
    out2_exact = bce_dice_loss(p2, t2, approx_sigmoid=False)
    jax.block_until_ready(out2_exact)
    assert jnp.allclose(out2_exact, ref2, atol=1e-5, rtol=1e-5), (out2_exact, ref2)
    out2 = bce_dice_loss(p2, t2)
    jax.block_until_ready(out2)
    assert jnp.allclose(out2, ref2, atol=1e-3, rtol=1e-3), (out2, ref2)

    # Case 3: narrow dtypes (bf16 logits, int8 targets) with C=1 so the sub-row
    # split (k=8) gives two row tiles for the "parallel" axis.
    p3 = jax.random.normal(k5, (2, 1, 64, 64), dtype=jnp.float32).astype(jnp.bfloat16)
    t3 = jax.random.bernoulli(k6, 0.4, (2, 1, 64, 64)).astype(jnp.int8)
    ref3 = _reference(p3, t3)
    out3 = bce_dice_loss(p3, t3)
    jax.block_until_ready(out3)
    assert jnp.allclose(out3, ref3, atol=1e-3, rtol=1e-3), (out3, ref3)

    print("KERNEL_OK")
</pallas_src>

<mosaic_0001>
module attributes {stable_mosaic.version = 11 : i64} {
  func.func @_bce_dice_stats_kernel(%arg0: i32, %arg1: i32, %arg2: memref<8x256xf32, #tpu.memory_space<vmem>>, %arg3: memref<8x256xf32, #tpu.memory_space<vmem>>, %arg4: memref<8x512xf32, #tpu.memory_space<vmem>>) attributes {dimension_semantics = [#tpu.dimension_semantics<parallel>, #tpu.dimension_semantics<arbitrary>], iteration_bounds = array<i64: 1, 1>, scalar_prefetch = 0 : i64, scratch_operands = 0 : i64, tpu.core_type = #tpu.core_type<tc>, window_params = [{transform_indices = @transform_0, window_bounds = array<i64: 8, 256>}, {transform_indices = @transform_1, window_bounds = array<i64: 8, 256>}, {transform_indices = @transform_2, window_bounds = array<i64: 8, 512>}]} {
    %c0_i32 = arith.constant 0 : i32
    %0 = arith.cmpi eq, %arg1, %c0_i32 : i32
    %1 = arith.extui %0 : i1 to i32
    %c0_i32_0 = arith.constant 0 : i32
    %2 = arith.cmpi ne, %1, %c0_i32_0 : i32
    scf.if %2 {
      %cst_21 = arith.constant 0.000000e+00 : f32
      %48 = vector.broadcast %cst_21 : f32 to vector<8x512xf32>
      %c0_22 = arith.constant 0 : index
      %c0_23 = arith.constant 0 : index
      %49 = vector.load %arg4[%c0_22, %c0_23] : memref<8x512xf32, #tpu.memory_space<vmem>>, vector<8x512xf32>
      tpu.vector_store %arg4[%c0_22, %c0_23], %48 {strides = array<i32>} : memref<8x512xf32, #tpu.memory_space<vmem>>, vector<8x512xf32>,
    } else {
    }
    %c0 = arith.constant 0 : index
    %c0_1 = arith.constant 0 : index
    %3 = vector.load %arg2[%c0, %c0_1] : memref<8x256xf32, #tpu.memory_space<vmem>>, vector<8x256xf32>
    %c0_2 = arith.constant 0 : index
    %c0_3 = arith.constant 0 : index
    %4 = vector.load %arg3[%c0_2, %c0_3] : memref<8x256xf32, #tpu.memory_space<vmem>>, vector<8x256xf32>
    %5 = math.absf %3 : vector<8x256xf32>
    %cst = arith.constant 0.000000e+00 : f32
    %6 = vector.broadcast %cst : f32 to vector<8x256xf32>
    %7 = arith.subf %6, %5 : vector<8x256xf32>
    %8 = math.exp %7 : vector<8x256xf32>
    %cst_4 = arith.constant 0.000000e+00 : f32
    %9 = vector.broadcast %cst_4 : f32 to vector<8x256xf32>
    %10 = arith.maximumf %3, %9 : vector<8x256xf32>
    %11 = arith.mulf %3, %4 : vector<8x256xf32>
    %12 = arith.subf %10, %11 : vector<8x256xf32>
    %13 = math.log1p %8 : vector<8x256xf32>
    %14 = arith.addf %12, %13 : vector<8x256xf32>
    %cst_5 = arith.constant 1.000000e+00 : f32
    %15 = vector.broadcast %cst_5 : f32 to vector<8x256xf32>
    %16 = arith.addf %15, %8 : vector<8x256xf32>
    %cst_6 = arith.constant 1.000000e+00 : f32
    %17 = vector.broadcast %cst_6 : f32 to vector<8x256xf32>
    %18 = arith.divf %17, %16 : vector<8x256xf32>
    %cst_7 = arith.constant 0.000000e+00 : f32
    %19 = vector.broadcast %cst_7 : f32 to vector<8x256xf32>
    %20 = arith.cmpf oge, %3, %19 : vector<8x256xf32>
    %21 = arith.mulf %8, %18 : vector<8x256xf32>
    %22 = arith.select %20, %18, %21 : vector<8x256xi1>, vector<8x256xf32>
    %c0_8 = arith.constant 0 : index
    %c0_9 = arith.constant 0 : index
    %23 = vector.load %arg4[%c0_8, %c0_9] : memref<8x512xf32, #tpu.memory_space<vmem>>, vector<8x128xf32>
    %24 = arith.mulf %22, %4 : vector<8x256xf32>
    %25 = vector.extract_strided_slice %24 {offsets = [0, 0], sizes = [8, 128], strides = [1, 1]} : vector<8x256xf32> to vector<8x128xf32>
    %26 = vector.extract_strided_slice %24 {offsets = [0, 128], sizes = [8, 128], strides = [1, 1]} : vector<8x256xf32> to vector<8x128xf32>
    %27 = arith.addf %25, %26 : vector<8x128xf32>
    %28 = arith.addf %23, %27 : vector<8x128xf32>
    %c0_10 = arith.constant 0 : index
    %c0_11 = arith.constant 0 : index
    %29 = vector.load %arg4[%c0_10, %c0_11] : memref<8x512xf32, #tpu.memory_space<vmem>>, vector<8x128xf32>
    tpu.vector_store %arg4[%c0_10, %c0_11], %28 {strides = array<i32>} : memref<8x512xf32, #tpu.memory_space<vmem>>, vector<8x128xf32>,
    %c0_12 = arith.constant 0 : index
    %c128 = arith.constant 128 : index
    %30 = vector.load %arg4[%c0_12, %c128] : memref<8x512xf32, #tpu.memory_space<vmem>>, vector<8x128xf32>
    %31 = vector.extract_strided_slice %22 {offsets = [0, 0], sizes = [8, 128], strides = [1, 1]} : vector<8x256xf32> to vector<8x128xf32>
    %32 = vector.extract_strided_slice %22 {offsets = [0, 128], sizes = [8, 128], strides = [1, 1]} : vector<8x256xf32> to vector<8x128xf32>
    %33 = arith.addf %31, %32 : vector<8x128xf32>
    %34 = arith.addf %30, %33 : vector<8x128xf32>
    %c0_13 = arith.constant 0 : index
    %c128_14 = arith.constant 128 : index
    %35 = vector.load %arg4[%c0_13, %c128_14] : memref<8x512xf32, #tpu.memory_space<vmem>>, vector<8x128xf32>
    tpu.vector_store %arg4[%c0_13, %c128_14], %34 {strides = array<i32>} : memref<8x512xf32, #tpu.memory_space<vmem>>, vector<8x128xf32>,
    %c0_15 = arith.constant 0 : index
    %c256 = arith.constant 256 : index
    %36 = vector.load %arg4[%c0_15, %c256] : memref<8x512xf32, #tpu.memory_space<vmem>>, vector<8x128xf32>
    %37 = vector.extract_strided_slice %4 {offsets = [0, 0], sizes = [8, 128], strides = [1, 1]} : vector<8x256xf32> to vector<8x128xf32>
    %38 = vector.extract_strided_slice %4 {offsets = [0, 128], sizes = [8, 128], strides = [1, 1]} : vector<8x256xf32> to vector<8x128xf32>
    %39 = arith.addf %37, %38 : vector<8x128xf32>
    %40 = arith.addf %36, %39 : vector<8x128xf32>
    %c0_16 = arith.constant 0 : index
    %c256_17 = arith.constant 256 : index
    %41 = vector.load %arg4[%c0_16, %c256_17] : memref<8x512xf32, #tpu.memory_space<vmem>>, vector<8x128xf32>
    tpu.vector_store %arg4[%c0_16, %c256_17], %40 {strides = array<i32>} : memref<8x512xf32, #tpu.memory_space<vmem>>, vector<8x128xf32>,
    %c0_18 = arith.constant 0 : index
    %c384 = arith.constant 384 : index
    %42 = vector.load %arg4[%c0_18, %c384] : memref<8x512xf32, #tpu.memory_space<vmem>>, vector<8x128xf32>
    %43 = vector.extract_strided_slice %14 {offsets = [0, 0], sizes = [8, 128], strides = [1, 1]} : vector<8x256xf32> to vector<8x128xf32>
    %44 = vector.extract_strided_slice %14 {offsets = [0, 128], sizes = [8, 128], strides = [1, 1]} : vector<8x256xf32> to vector<8x128xf32>
    %45 = arith.addf %43, %44 : vector<8x128xf32>
    %46 = arith.addf %42, %45 : vector<8x128xf32>
    %c0_19 = arith.constant 0 : index
    %c384_20 = arith.constant 384 : index
    %47 = vector.load %arg4[%c0_19, %c384_20] : memref<8x512xf32, #tpu.memory_space<vmem>>, vector<8x128xf32>
    tpu.vector_store %arg4[%c0_19, %c384_20], %46 {strides = array<i32>} : memref<8x512xf32, #tpu.memory_space<vmem>>, vector<8x128xf32>,
    return
  }
  func.func @transform_0(%arg0: i32, %arg1: i32) -> (i32, i32) {
    %c0_i32 = arith.constant 0 : i32
    return %arg0, %arg1 : i32, i32
  }
  func.func @transform_1(%arg0: i32, %arg1: i32) -> (i32, i32) {
    %c0_i32 = arith.constant 0 : i32
    return %arg0, %arg1 : i32, i32
  }
  func.func @transform_2(%arg0: i32, %arg1: i32) -> (i32, i32) {
    %c0_i32 = arith.constant 0 : i32
    %c0_i32_0 = arith.constant 0 : i32
    return %arg0, %c0_i32 : i32, i32
  }
}

</mosaic_0001>

<bundles_post_ra>
// kernel: tpu_custom_call.1
= control target key start
LH: loop header
LB: loop body
LE: loop exit
PB: predicated region body
PF: predicated region fallthrough
CT: control target
= control target key end

     0   :  { %7 = vsyncpa [#allocation3], 0  ;;  %s331_s0 = inlined_call_operand.hbm [shape: f32[8,256], index: 0, kind: input, shape index: {}]   ;;  %s332_s1 = inlined_call_operand.hbm [shape: f32[8,256], index: 1, kind: input, shape index: {}]   ;;  %s333_s2 = inlined_call_operand.hbm [shape: f32[8,512], index: 2, kind: output, shape index: {}]  }
   0x1   :  { %8 = vsyncpa [#allocation6], 0 }
   0x2   :  { %9 = vsyncpa [#allocation4], 0  ;;  %s15_s11 = sshll.u32 %s331_s0, 4  ;;  %s254_s12 = smov [#allocation2]   ;;  %s16_s11 = int_to_ptr.hbm [resolvable:$true] %s15_s11 }
   0x3   :  { %s17_s13 = sshll.u32 %s254_s12, 4  ;;  %s26_s16 = sshll.u32 %s332_s1, 4  ;;  %s18_s13 = int_to_ptr.vmem [resolvable:$true] %s17_s13  ;;  %s27_s16 = int_to_ptr.hbm [resolvable:$true] %s26_s16 }
   0x4   :  { %20 = dma.hbm_to_vmem [thread:$0]  %s16_s11, 256, %s18_s13, [#allocation3]  }
   0x5   :  { %s255_s17 = smov [#allocation5]  }
   0x6   :  { %s28_s18 = sshll.u32 %s255_s17, 4  ;;  %s29_s18 = int_to_ptr.vmem [resolvable:$true] %s28_s18 }
   0x7   :  { %31 = dma.hbm_to_vmem [thread:$0]  %s27_s16, 256, %s29_s18, [#allocation6]  }
   0x8   :  { %248 = dma.done.wait [#allocation3], 256  }
   0x9   :  { %249 = vsyncadd [#allocation3], 4294967040 }
   0xa   :  { %250 = dma.done.wait [#allocation6], 256  }
   0xb   :  { %251 = vsyncadd [#allocation6], 4294967040  ;;  %v278_v0 = vld [vmem:[#allocation2] sm:$0xff]  ;;  %v280_v1 = vld [vmem:[#allocation2 + $0x8] sm:$0xff]  ;;  %s256_s0 = smov [#allocation7]   ;;  %s149_s21 = sshll.u32 %s333_s2, 4  ;;  %s150_s21 = int_to_ptr.hbm [resolvable:$true] %s149_s21 }
   0xc   :  { %v52_v2 = vand.u32 2147483647, %v278_v0  ;;  %v53_v3 = vand.u32 2147483647, %v280_v1  ;;  %v284_v8 = vld [vmem:[#allocation5] sm:$0xff]  ;;  %v286_v9 = vld [vmem:[#allocation5 + $0x8] sm:$0xff] }
   0xd   :  { %v135_v10 = vadd.f32 %v286_v9, %v284_v8  ;;  %v62_v17 = vmul.f32 %v284_v8, %v278_v0  ;;  %v60_v18 = vmax.f32 %v278_v0, 0.0  ;;  %v61_v19 = vmax.f32 %v280_v1, 0.0  ;;  %s147_s1 = sshll.u32 %s256_s0, 4  ;;  %s148_s1 = int_to_ptr.vmem [resolvable:$true] %s147_s1 }
   0xe   :  { %v54_v4 = vsub.f32 0.0, %v52_v2  ;;  %v55_v5 = vsub.f32 0.0, %v53_v3  ;;  %v63_v20 = vmul.f32 %v286_v9, %v280_v1  ;;  %vm118_vm10 = vcmp.ge.f32.partialorder %v278_v0, 0.0 }
   0xf   :  { %137 = vst [vmem:[#allocation7 + $0x10] sm:$0xff] %v135_v10  ;;  %v64_v27 = vsub.f32 %v60_v18, %v62_v17  ;;  %vm119_vm11 = vcmp.ge.f32.partialorder %v280_v1, 0.0 }
  0x10   :  { %v56_v6 = vmul.f32 1.442695, %v54_v4  ;;  %v58_v7 = vmul.f32 1.442695, %v55_v5  ;;  %v65_v28 = vsub.f32 %v61_v19, %v63_v20 }
  0x12   :  { %164 = vpow2.f32 %v56_v6 }
  0x13   :  { %166 = vpow2.f32 %v58_v7 }
  0x18   :  { %v290_v11 = vpop.eup %164 }
  0x19   :  { %v292_v12 = vpop.eup %166  ;;  %v66_v13 = vadd.f32 1.0, %v290_v11  ;;  %v69_v15 = vmul.f32 -0.5, %v290_v11  ;;  %v72_v22 = vand.u32 2147483647, %v290_v11 }
  0x1a   :  { %v75_v14 = vadd.f32 1.0, %v292_v12  ;;  %v78_v16 = vmul.f32 -0.5, %v292_v12  ;;  %v81_v24 = vand.u32 2147483647, %v292_v12 }
  0x1b   :  { %168 = vrcp.f32 %v66_v13  ;;  %v70_v21 = vadd.f32 1.0, %v69_v15  ;;  %vm93_vm0 = vweird.f32 %v66_v13  ;;  %v97_v26 = vand.u32 2147483647, %v66_v13 }
  0x1c   :  { %170 = vrcp.f32 %v75_v14  ;;  %v79_v23 = vadd.f32 1.0, %v78_v16  ;;  %v99_v31 = vand.u32 2147483648, %v66_v13  ;;  %vm108_vm1 = vweird.f32 %v75_v14 }
  0x1d   :  { %172 = vlog2.f32 %v66_v13  ;;  %v71_v32 = vmul.f32 %v290_v11, %v70_v21  ;;  %v114_v35 = vand.u32 2147483648, %v75_v14  ;;  %vm307_vm2 = vcmp.lt.f32.partialorder %v72_v22, 0.0004427343 }
  0x1e   :  { %174 = vlog2.f32 %v75_v14  ;;  %v80_v37 = vmul.f32 %v292_v12, %v79_v23  ;;  %vm312_vm4 = vcmp.lt.f32.partialorder %v81_v24, 0.0004427343  ;;  %v112_v43 = vand.u32 2147483647, %v75_v14 }
  0x1f   :  { %v100_v47 = vor.u32 1.1754944e-38, %v99_v31  ;;  %vm98_vm7 = vcmp.eq.f32.partialorder %v97_v26, 8.507059e+37  ;;  %v115_v52 = vor.u32 1.1754944e-38, %v114_v35 }
  0x20   :  { %vm113_vm9 = vcmp.eq.f32.partialorder %v112_v43, 8.507059e+37 }
  0x21   :  { %v169_v25 = vpop.eup %168 }
  0x22   :  { %v171_v29 = vpop.eup %170  ;;  %v89_v30 = vmul.f32 %v169_v25, %v66_v13  ;;  %vm94_vm3 = vweird.f32 %v169_v25 }
  0x23   :  { %v173_v33 = vpop.eup %172  ;;  %v104_v34 = vmul.f32 %v171_v29, %v75_v14  ;;  %vm109_vm5 = vweird.f32 %v171_v29  ;;  %vm95_vm6 = vmor %vm93_vm0, %vm94_vm3 }
  0x24   :  { %v175_v38 = vpop.eup %174  ;;  %v90_v39 = vsub.f32 1.0, %v89_v30  ;;  %v68_v40 = vmul.f32 0.6931472, %v173_v33  ;;  %vm110_vm8 = vmor %vm108_vm1, %vm109_vm5 }
  0x25   :  { %v105_v42 = vsub.f32 1.0, %v104_v34  ;;  %v77_v44 = vmul.f32 0.6931472, %v175_v38 }
  0x26   :  { %v91_v45 = vmul.f32 %v169_v25, %v90_v39  ;;  %v74_v46 = vsel %vm307_vm2, %v71_v32, %v68_v40 }
  0x27   :  { %v106_v48 = vmul.f32 %v171_v29, %v105_v42  ;;  %v83_v49 = vsel %vm312_vm4, %v80_v37, %v77_v44  ;;  %v84_v50 = vadd.f32 %v74_v46, %v64_v27 }
  0x28   :  { %v92_v51 = vadd.f32 %v169_v25, %v91_v45  ;;  %v85_v53 = vadd.f32 %v83_v49, %v65_v28 }
  0x29   :  { %v107_v54 = vadd.f32 %v171_v29, %v106_v48 }
  0x2a   :  { %v96_v55 = vsel %vm95_vm6, %v169_v25, %v92_v51  ;;  %v139_v56 = vadd.f32 %v85_v53, %v84_v50 }
  0x2b   :  { %v101_v57 = vsel %vm98_vm7, %v100_v47, %v96_v55  ;;  %v111_v58 = vsel %vm110_vm8, %v171_v29, %v107_v54 }
  0x2c   :  { %v116_v59 = vsel %vm113_vm9, %v115_v52, %v111_v58  ;;  %v120_v60 = vmul.f32 %v290_v11, %v101_v57  ;;  %141 = vst [vmem:[#allocation7 + $0x18] sm:$0xff] %v139_v56 }
  0x2d   :  { %v121_v61 = vmul.f32 %v292_v12, %v116_v59 }
  0x2e   :  { %v122_v62 = vsel %vm118_vm10, %v101_v57, %v120_v60 }
  0x2f   :  { %v123_v63 = vsel %vm119_vm11, %v116_v59, %v121_v61  ;;  %v125_v2 = vmul.f32 %v122_v62, %v284_v8 }
  0x30   :  { %v126_v3 = vmul.f32 %v123_v63, %v286_v9  ;;  %v131_v4 = vadd.f32 %v123_v63, %v122_v62 }
  0x32   :  { %v127_v0 = vadd.f32 %v126_v3, %v125_v2  ;;  %133 = vst [vmem:[#allocation7 + $0x8] sm:$0xff] %v131_v4 }
  0x34   :  { %129 = vst [vmem:[#allocation7] sm:$0xff] %v127_v0 }
  0x35   :  { %152 = dma.vmem_to_hbm [thread:$0]  %s148_s1, 512, %s150_s21, [#allocation4]  }
  0x36   :  { %252 = dma.done.wait [#allocation4], 512  }
  0x37   :  { %253 = vsyncadd [#allocation4], 4294966784 }
  0x38   :  { %157 = vsyncpa [#allocation3], 1 }
  0x39   :  { %158 = vsyncpa [#allocation6], 1 }
  0x3a   :  { %159 = vsyncpa [#allocation4], 1 }

</bundles_post_ra>
